<compile_context>
chip_gen: v7x
topology: tpu7x:2x2x1
jax: 0.10.0
libtpu: 0.0.40
codegen_flags: <defaults>
</compile_context>

<pallas_src>
import jax
import jax.numpy as jnp
from jax.experimental import pallas as pl
from jax.experimental.pallas import tpu as pltpu

# ---------------- model hyper-parameters (small, consistent with the module) --
BATCH = 2
CHANNELS = 1
IMG_SIZE = 16
IN_DIM = CHANNELS * IMG_SIZE * IMG_SIZE   # prod(img_shape) = 256
HIDDEN = 512
LATENT_DIM = 10
HEAD_DIM = 2 * LATENT_DIM                 # fused (mu | logvar) head width = 20
BN_EPS = 1e-5
LRELU_SLOPE = 0.2

# Packed small-operand slab layout, shape (8, HIDDEN) f32:
#   rows 0..B-1, lanes [0, IN_DIM)                      -> img_flat
#   rows 0..B-1, lanes [IN_DIM, IN_DIM+LATENT_DIM)      -> reparam noise
#   row 2 -> b1 ; row 3 -> b2 ; row 4 -> gamma ; row 5 -> beta   (each HIDDEN wide)
#   row 6, lanes [0, HEAD_DIM)                          -> fused head bias (bmu|blv)
#   row 7 -> unused
ROW_B1, ROW_B2, ROW_GAMMA, ROW_BETA, ROW_BHEAD = 2, 3, 4, 5, 6


def encoder_kernel(slab_ref, w1_ref, w2_ref, wh_ref, z_ref):
    # ---- unpack the small-operand slab ---------------------------------------
    x = slab_ref[0:BATCH, 0:IN_DIM]                              # (B, IN_DIM) f32
    noise = slab_ref[0:BATCH, IN_DIM:IN_DIM + LATENT_DIM]        # (B, LATENT)
    b1 = slab_ref[ROW_B1:ROW_B1 + 1, :]                          # (1, HIDDEN)
    b2 = slab_ref[ROW_B2:ROW_B2 + 1, :]
    gamma = slab_ref[ROW_GAMMA:ROW_GAMMA + 1, :]
    beta = slab_ref[ROW_BETA:ROW_BETA + 1, :]
    b_head = slab_ref[ROW_BHEAD:ROW_BHEAD + 1, 0:HEAD_DIM]       # (1, HEAD_DIM)

    # ---- Linear(IN_DIM, 512) + LeakyReLU(0.2) --------------------------------
    h1 = jnp.dot(x.astype(jnp.bfloat16), w1_ref[...],
                 preferred_element_type=jnp.float32) + b1
    h1 = jnp.maximum(h1, LRELU_SLOPE * h1)

    # ---- Linear(512, 512) + BatchNorm1d (training mode, batch stats) ---------
    h2 = jnp.dot(h1.astype(jnp.bfloat16), w2_ref[...],
                 preferred_element_type=jnp.float32) + b2
    mean = jnp.mean(h2, axis=0, keepdims=True)                       # (1, HIDDEN)
    var = jnp.mean(h2 * h2, axis=0, keepdims=True) - mean * mean     # one-pass, biased
    var = jnp.maximum(var, 0.0)                                      # guard cancellation
    h2 = (h2 - mean) * jax.lax.rsqrt(var + BN_EPS)
    h2 = h2 * gamma + beta
    h2 = jnp.maximum(h2, LRELU_SLOPE * h2)
    # TODO(synk): PyTorch BatchNorm1d training mode also updates running_mean/var
    # buffers; only the forward output is reproduced here.

    # ---- fused mu / logvar head: one (512, 20) matmul (no zero-column DMA) ----
    head = jnp.dot(h2.astype(jnp.bfloat16), wh_ref[...],
                   preferred_element_type=jnp.float32) + b_head      # (B, 20)
    mu = head[:, :LATENT_DIM]
    logvar = head[:, LATENT_DIM:HEAD_DIM]

    # ---- reparameterization: z = eps * exp(logvar/2) + mu ---------------------
    std = jnp.exp(logvar * 0.5)
    z_ref[...] = noise * std + mu


def encoder_forward(img_nchw, params, noise):
    B = img_nchw.shape[0]
    img_flat = img_nchw.reshape(B, -1).astype(jnp.float32)    # == img.view(B, -1)

    # fold per-call data (img, noise) into the pre-built parameter slab
    slab = params["slab"]
    slab = slab.at[0:B, 0:IN_DIM].set(img_flat)
    slab = slab.at[0:B, IN_DIM:IN_DIM + LATENT_DIM].set(noise.astype(jnp.float32))

    vmem_spec = pl.BlockSpec(memory_space=pltpu.MemorySpace.VMEM)
    inputs = (slab,               # (8, HIDDEN)       f32 packed small operands
              params["w1"],       # (IN_DIM, HIDDEN)  bf16
              params["w2"],       # (HIDDEN, HIDDEN)  bf16
              params["w_head"])   # (HIDDEN, HEAD_DIM) bf16 (mu | logvar)

    flops = 2 * B * (IN_DIM * HIDDEN + HIDDEN * HIDDEN + HIDDEN * HEAD_DIM)
    bytes_accessed = (slab.size * 4 + params["w1"].size * 2
                      + params["w2"].size * 2 + params["w_head"].size * 2
                      + B * LATENT_DIM * 4)
    cost = pl.CostEstimate(flops=flops,
                           transcendentals=HIDDEN + B * LATENT_DIM,
                           bytes_accessed=bytes_accessed)

    z = pl.pallas_call(
        encoder_kernel,
        out_shape=jax.ShapeDtypeStruct((B, LATENT_DIM), jnp.float32),
        in_specs=[vmem_spec] * len(inputs),
        out_specs=vmem_spec,
        cost_estimate=cost,
    )(*inputs)
    return z


def init_params(key):
    """PyTorch-style Linear init: U(-1/sqrt(fan_in), 1/sqrt(fan_in)).
    Weights stored transposed as (in, out) in bf16; the two latent heads fused
    into one (HIDDEN, 20) weight; every small f32 vector packed into one
    (8, HIDDEN) slab (rows 0-1 reserved for per-call img/noise)."""
    def linear(key, fan_in, fan_out):
        kw, kb = jax.random.split(key)
        bound = 1.0 / (fan_in ** 0.5)
        w = jax.random.uniform(kw, (fan_in, fan_out), jnp.float32, -bound, bound)
        b = jax.random.uniform(kb, (fan_out,), jnp.float32, -bound, bound)
        return w, b

    k1, k2, k3, k4 = jax.random.split(key, 4)
    w1, b1 = linear(k1, IN_DIM, HIDDEN)
    w2, b2 = linear(k2, HIDDEN, HIDDEN)
    wmu, bmu = linear(k3, HIDDEN, LATENT_DIM)
    wlv, blv = linear(k4, HIDDEN, LATENT_DIM)

    gamma = jnp.ones((HIDDEN,), jnp.float32)     # BatchNorm1d affine init
    beta = jnp.zeros((HIDDEN,), jnp.float32)

    # fused mu/logvar head, stored at its natural width (no zero-column padding)
    w_head = jnp.concatenate([wmu, wlv], axis=1)             # (HIDDEN, 20)
    b_head = jnp.concatenate([bmu, blv], axis=0)             # (20,)

    # pack all small f32 operands into one (8, HIDDEN) slab
    slab = jnp.zeros((8, HIDDEN), jnp.float32)
    slab = slab.at[ROW_B1].set(b1)
    slab = slab.at[ROW_B2].set(b2)
    slab = slab.at[ROW_GAMMA].set(gamma)
    slab = slab.at[ROW_BETA].set(beta)
    slab = slab.at[ROW_BHEAD, 0:HEAD_DIM].set(b_head)

    return {
        "w1": w1.astype(jnp.bfloat16),
        "w2": w2.astype(jnp.bfloat16),
        "w_head": w_head.astype(jnp.bfloat16),
        "slab": slab,
    }


if __name__ == "__main__":
    root = jax.random.PRNGKey(0)
    k_img, k_params, k_noise = jax.random.split(root, 3)

    img = jax.random.normal(k_img, (BATCH, CHANNELS, IMG_SIZE, IMG_SIZE), jnp.float32)
    params = init_params(k_params)
    # standard-normal noise for the reparameterization trick (deterministic here;
    # the PyTorch reference uses np.random.normal).
    noise = jax.random.normal(k_noise, (BATCH, LATENT_DIM), jnp.float32)

    z = encoder_forward(img, params, noise)
    jax.block_until_ready(z)
    assert z.shape == (BATCH, LATENT_DIM) and z.dtype == jnp.float32
    assert bool(jnp.all(jnp.isfinite(z)))
    print("KERNEL_OK")
</pallas_src>

<mosaic_0001>
module attributes {stable_mosaic.version = 11 : i64} {
  func.func @encoder_kernel(%arg0: memref<8x512xf32, #tpu.memory_space<vmem>>, %arg1: memref<256x512xbf16, #tpu.memory_space<vmem>>, %arg2: memref<512x512xbf16, #tpu.memory_space<vmem>>, %arg3: memref<512x20xbf16, #tpu.memory_space<vmem>>, %arg4: memref<2x10xf32, #tpu.memory_space<vmem>>) attributes {dimension_semantics = [], scalar_prefetch = 0 : i64, scratch_operands = 0 : i64, tpu.core_type = #tpu.core_type<tc>} {
    %c0 = arith.constant 0 : index
    %c0_0 = arith.constant 0 : index
    %0 = vector.load %arg0[%c0, %c0_0] : memref<8x512xf32, #tpu.memory_space<vmem>>, vector<2x256xf32>
    %c0_1 = arith.constant 0 : index
    %c256 = arith.constant 256 : index
    %1 = vector.load %arg0[%c0_1, %c256] : memref<8x512xf32, #tpu.memory_space<vmem>>, vector<2x10xf32>
    %c2 = arith.constant 2 : index
    %c0_2 = arith.constant 0 : index
    %2 = vector.load %arg0[%c2, %c0_2] : memref<8x512xf32, #tpu.memory_space<vmem>>, vector<1x512xf32>
    %c3 = arith.constant 3 : index
    %c0_3 = arith.constant 0 : index
    %3 = vector.load %arg0[%c3, %c0_3] : memref<8x512xf32, #tpu.memory_space<vmem>>, vector<1x512xf32>
    %c4 = arith.constant 4 : index
    %c0_4 = arith.constant 0 : index
    %4 = vector.load %arg0[%c4, %c0_4] : memref<8x512xf32, #tpu.memory_space<vmem>>, vector<1x512xf32>
    %c5 = arith.constant 5 : index
    %c0_5 = arith.constant 0 : index
    %5 = vector.load %arg0[%c5, %c0_5] : memref<8x512xf32, #tpu.memory_space<vmem>>, vector<1x512xf32>
    %c6 = arith.constant 6 : index
    %c0_6 = arith.constant 0 : index
    %6 = vector.load %arg0[%c6, %c0_6] : memref<8x512xf32, #tpu.memory_space<vmem>>, vector<1x20xf32>
    %7 = arith.truncf %0 : vector<2x256xf32> to vector<2x256xbf16>
    %c0_7 = arith.constant 0 : index
    %c0_8 = arith.constant 0 : index
    %8 = vector.load %arg1[%c0_7, %c0_8] : memref<256x512xbf16, #tpu.memory_space<vmem>>, vector<256x512xbf16>
    %cst = arith.constant dense<0.000000e+00> : vector<2x512xf32>
    %9 = tpu.matmul %7, %8, %cst {dimension_numbers = #tpu.dot_dimension_numbers<[1], [0], [0], [1], [0, 0, 1, 1], [], []>} : vector<2x256xbf16>, vector<256x512xbf16>, vector<2x512xf32> -> vector<2x512xf32>
    %10 = vector.broadcast %2 : vector<1x512xf32> to vector<2x512xf32>
    %11 = arith.addf %9, %10 : vector<2x512xf32>
    %cst_9 = arith.constant 2.000000e-01 : f32
    %12 = vector.broadcast %cst_9 : f32 to vector<2x512xf32>
    %13 = arith.mulf %12, %11 : vector<2x512xf32>
    %14 = arith.maximumf %11, %13 : vector<2x512xf32>
    %15 = arith.truncf %14 : vector<2x512xf32> to vector<2x512xbf16>
    %c0_10 = arith.constant 0 : index
    %c0_11 = arith.constant 0 : index
    %16 = vector.load %arg2[%c0_10, %c0_11] : memref<512x512xbf16, #tpu.memory_space<vmem>>, vector<512x512xbf16>
    %cst_12 = arith.constant dense<0.000000e+00> : vector<2x512xf32>
    %17 = tpu.matmul %15, %16, %cst_12 {dimension_numbers = #tpu.dot_dimension_numbers<[1], [0], [0], [1], [0, 0, 1, 1], [], []>} : vector<2x512xbf16>, vector<512x512xbf16>, vector<2x512xf32> -> vector<2x512xf32>
    %18 = vector.broadcast %3 : vector<1x512xf32> to vector<2x512xf32>
    %19 = arith.addf %17, %18 : vector<2x512xf32>
    %cst_13 = arith.constant dense<0.000000e+00> : vector<512xf32>
    %20 = vector.multi_reduction <add>, %19, %cst_13 [0] : vector<2x512xf32> to vector<512xf32>
    %21 = vector.shape_cast %20 : vector<512xf32> to vector<1x512xf32>
    %cst_14 = arith.constant 2.000000e+00 : f32
    %22 = vector.broadcast %cst_14 : f32 to vector<1x512xf32>
    %23 = arith.divf %21, %22 : vector<1x512xf32>
    %24 = arith.mulf %19, %19 : vector<2x512xf32>
    %cst_15 = arith.constant dense<0.000000e+00> : vector<512xf32>
    %25 = vector.multi_reduction <add>, %24, %cst_15 [0] : vector<2x512xf32> to vector<512xf32>
    %26 = vector.shape_cast %25 : vector<512xf32> to vector<1x512xf32>
    %cst_16 = arith.constant 2.000000e+00 : f32
    %27 = vector.broadcast %cst_16 : f32 to vector<1x512xf32>
    %28 = arith.divf %26, %27 : vector<1x512xf32>
    %29 = arith.mulf %23, %23 : vector<1x512xf32>
    %30 = arith.subf %28, %29 : vector<1x512xf32>
    %cst_17 = arith.constant 0.000000e+00 : f32
    %31 = vector.broadcast %cst_17 : f32 to vector<1x512xf32>
    %32 = arith.maximumf %30, %31 : vector<1x512xf32>
    %33 = vector.broadcast %23 : vector<1x512xf32> to vector<2x512xf32>
    %34 = arith.subf %19, %33 : vector<2x512xf32>
    %cst_18 = arith.constant 9.99999974E-6 : f32
    %35 = vector.broadcast %cst_18 : f32 to vector<1x512xf32>
    %36 = arith.addf %32, %35 : vector<1x512xf32>
    %37 = math.rsqrt %36 : vector<1x512xf32>
    %38 = vector.broadcast %37 : vector<1x512xf32> to vector<2x512xf32>
    %39 = arith.mulf %34, %38 : vector<2x512xf32>
    %40 = vector.broadcast %4 : vector<1x512xf32> to vector<2x512xf32>
    %41 = arith.mulf %39, %40 : vector<2x512xf32>
    %42 = vector.broadcast %5 : vector<1x512xf32> to vector<2x512xf32>
    %43 = arith.addf %41, %42 : vector<2x512xf32>
    %cst_19 = arith.constant 2.000000e-01 : f32
    %44 = vector.broadcast %cst_19 : f32 to vector<2x512xf32>
    %45 = arith.mulf %44, %43 : vector<2x512xf32>
    %46 = arith.maximumf %43, %45 : vector<2x512xf32>
    %47 = arith.truncf %46 : vector<2x512xf32> to vector<2x512xbf16>
    %c0_20 = arith.constant 0 : index
    %c0_21 = arith.constant 0 : index
    %48 = vector.load %arg3[%c0_20, %c0_21] : memref<512x20xbf16, #tpu.memory_space<vmem>>, vector<512x20xbf16>
    %cst_22 = arith.constant dense<0.000000e+00> : vector<2x20xf32>
    %49 = tpu.matmul %47, %48, %cst_22 {dimension_numbers = #tpu.dot_dimension_numbers<[1], [0], [0], [1], [0, 0, 1, 1], [], []>} : vector<2x512xbf16>, vector<512x20xbf16>, vector<2x20xf32> -> vector<2x20xf32>
    %50 = vector.broadcast %6 : vector<1x20xf32> to vector<2x20xf32>
    %51 = arith.addf %49, %50 : vector<2x20xf32>
    %52 = vector.extract_strided_slice %51 {offsets = [0, 0], sizes = [2, 10], strides = [1, 1]} : vector<2x20xf32> to vector<2x10xf32>
    %53 = vector.extract_strided_slice %51 {offsets = [0, 10], sizes = [2, 10], strides = [1, 1]} : vector<2x20xf32> to vector<2x10xf32>
    %cst_23 = arith.constant 5.000000e-01 : f32
    %54 = vector.broadcast %cst_23 : f32 to vector<2x10xf32>
    %55 = arith.mulf %53, %54 : vector<2x10xf32>
    %56 = math.exp %55 : vector<2x10xf32>
    %57 = arith.mulf %1, %56 : vector<2x10xf32>
    %58 = arith.addf %57, %52 : vector<2x10xf32>
    %c0_24 = arith.constant 0 : index
    %c0_25 = arith.constant 0 : index
    %59 = vector.load %arg4[%c0_24, %c0_25] : memref<2x10xf32, #tpu.memory_space<vmem>>, vector<2x10xf32>
    tpu.vector_store %arg4[%c0_24, %c0_25], %58 {strides = array<i32>} : memref<2x10xf32, #tpu.memory_space<vmem>>, vector<2x10xf32>,
    return
  }
}

</mosaic_0001>

<bundles_post_ra>
// kernel: tpu_custom_call.1
= control target key start
LH: loop header
LB: loop body
LE: loop exit
PB: predicated region body
PF: predicated region fallthrough
CT: control target
= control target key end

     0   :  { %9 = vsyncpa [#allocation3], 0  ;;  %s2986_s0 = inlined_call_operand.vmem [shape: f32[8,512], index: 0, kind: input, shape index: {}]   ;;  %s2987_s1 = inlined_call_operand.hbm [shape: bf16[256,512], index: 1, kind: input, shape index: {}]   ;;  %s2988_s2 = inlined_call_operand.hbm [shape: bf16[512,512], index: 2, kind: input, shape index: {}]   ;;  %s2989_s3 = inlined_call_operand.vmem [shape: bf16[512,20], index: 3, kind: input, shape index: {}]   ;;  %s2990_s4 = inlined_call_operand.hbm [shape: f32[2,10], index: 4, kind: output, shape index: {}]  }
   0x1   :  { %10 = vsyncpa [#allocation6], 0 }
   0x2   :  { %11 = vsyncpa [#allocation4], 0  ;;  %s2728_s15 = smov [#allocation2]   ;;  %s2656_s19 = scalar_lea.hbm %s2987_s1, 8192 }
   0x3   :  { %s19_s16 = sshll.u32 %s2728_s15, 4  ;;  %p2657_p0 = scmp.ne.s32.totalorder %s2987_s1, %s2656_s19  ;;  %s20_s16 = int_to_ptr.vmem [resolvable:$true] %s19_s16 }
   0x4   :  { %p2660_p1 = scmp.lt.u32.totalorder %s2656_s19, %s2987_s1 }
   0x6   :  { %p2662_p2 = pnand %p2660_p1, %p2657_p0 }
   0x8   :  { %2665 = shalt.err (!%p2662_p2)
}
   0x9   :  { %s2666_s24 = scalar_lea.vmem %s20_s16, 8192  ;;  %p2671_p4 = scmp.lt.s32.totalorder %s20_s16, %s20_s16 }
   0xa   :  { %p2667_p3 = scmp.ne.s32.totalorder %s20_s16, %s2666_s24  ;;  %p2672_p5 = scmp.lt.s32.totalorder %s2666_s24, %s2666_s24 }
   0xc   :  { %p2673_p6 = por %p2672_p5, %p2671_p4 }
   0xe   :  { %p2674_p7 = pnand %p2673_p6, %p2667_p3 }
  0x10   :  { %2677 = shalt.err (!%p2674_p7)
}
  0x11   :  { %s2729_s25 = smov 256   ;;  %s2730_s26 = smov 16  }
  0x12   :  { %25 = dma.hbm_to_vmem [thread:$0]  %s2987_s1, 8192, %s20_s16, [#allocation3], %s2729_s25, %s2729_s25, %s2730_s26  }
  0x13   :  { %s2731_s29 = smov [#allocation5]   ;;  %s2678_s7 = scalar_lea.hbm %s2988_s2, 16384 }
  0x14   :  { %s31_s30 = sshll.u32 %s2731_s29, 4  ;;  %p2679_p8 = scmp.ne.s32.totalorder %s2988_s2, %s2678_s7  ;;  %s32_s30 = int_to_ptr.vmem [resolvable:$true] %s31_s30 }
  0x15   :  { %p2682_p9 = scmp.lt.u32.totalorder %s2678_s7, %s2988_s2 }
  0x17   :  { %p2684_p10 = pnand %p2682_p9, %p2679_p8 }
  0x19   :  { %2687 = shalt.err (!%p2684_p10)
}
  0x1a   :  { %s2688_s12 = scalar_lea.vmem %s32_s30, 16384  ;;  %p2693_p12 = scmp.lt.s32.totalorder %s32_s30, %s32_s30 }
  0x1b   :  { %p2689_p11 = scmp.ne.s32.totalorder %s32_s30, %s2688_s12  ;;  %p2694_p13 = scmp.lt.s32.totalorder %s2688_s12, %s2688_s12 }
  0x1d   :  { %p2695_p0 = por %p2694_p13, %p2693_p12 }
  0x1f   :  { %p2696_p1 = pnand %p2695_p0, %p2689_p11 }
  0x21   :  { %2699 = shalt.err (!%p2696_p1)
}
  0x22   :  { %37 = dma.hbm_to_vmem [thread:$0]  %s2988_s2, 16384, %s32_s30, [#allocation6], %s2729_s25, %s2729_s25, %s2730_s26  }
  0x23   :  { %2722 = dma.done.wait [#allocation3], 8192  }
  0x24   :  { %2723 = vsyncadd [#allocation3], 4294959104 }
  0x25   :  { %2724 = dma.done.wait [#allocation6], 16384  }
  0x26   :  { %2725 = vsyncadd [#allocation6], 4294950912  ;;  %v2326_v0 = vld [vmem:[#allocation2 + $0x4] ss:$16 sps:$4 sm:$0xff]   ;;  %v2328_v1 = vld [vmem:[#allocation2] ss:$16 sps:$4 sm:$0xff]  }
  0x27   :  { %466 = vmatprep.subr.bf16.mxu0 %v2326_v0  ;;  %v2329_v2 = vld [vmem:[#allocation2 + $0x24] ss:$16 sps:$4 sm:$0xff]   ;;  %v2331_v3 = vld [vmem:[#allocation2 + $0x20] ss:$16 sps:$4 sm:$0xff]   ;;  %v2373_v13 = vld [vmem:[#allocation2 + $0xc] ss:$16 sps:$4 sm:$0xff]  }
  0x28   :  { %467 = vmatpush1.bf16.msra.mxu0 %v2328_v1  ;;  %v2332_v4 = vld [vmem:[#allocation2 + $0x44] ss:$16 sps:$4 sm:$0xff]   ;;  %v2334_v5 = vld [vmem:[#allocation2 + $0x40] ss:$16 sps:$4 sm:$0xff]   ;;  %v2376_v15 = vld [vmem:[#allocation2 + $0x8] ss:$16 sps:$4 sm:$0xff]   ;;  %507 = vmatprep.subr.bf16.mxu1 %v2373_v13 }
  0x29   :  { %468 = vmatprep.subr.bf16.mxu0 %v2329_v2  ;;  %v2335_v6 = vld [vmem:[#allocation2 + $0x64] ss:$16 sps:$4 sm:$0xff]   ;;  %v2337_v7 = vld [vmem:[#allocation2 + $0x60] ss:$16 sps:$4 sm:$0xff]   ;;  %v48_v16 = vld [vmem:[%s2986_s0 + $0x8] sm:$0x3]  ;;  %508 = vmatpush1.bf16.msra.mxu1 %v2376_v15 }
  0x2a   :  { %v2338_v8 = vld [vmem:[#allocation2 + $0x84] ss:$16 sps:$4 sm:$0xff]   ;;  %v2340_v9 = vld [vmem:[#allocation2 + $0x80] ss:$16 sps:$4 sm:$0xff]   ;;  %v60_v18 = vpack.c.bf16 %v48_v16, %v48_v16  ;;  %v2377_v19 = vld [vmem:[#allocation2 + $0x2c] ss:$16 sps:$4 sm:$0xff]  }
  0x2b   :  { %v2341_v10 = vld [vmem:[#allocation2 + $0xa4] ss:$16 sps:$4 sm:$0xff]   ;;  %v2343_v11 = vld [vmem:[#allocation2 + $0xa0] ss:$16 sps:$4 sm:$0xff]   ;;  %v2379_v20 = vld [vmem:[#allocation2 + $0x28] ss:$16 sps:$4 sm:$0xff]   ;;  %509 = vmatprep.subr.bf16.mxu1 %v2377_v19 }
  0x2c   :  { %469 = vmatpush1.bf16.msra.mxu0 %v2331_v3  ;;  %v2344_v12 = vld [vmem:[#allocation2 + $0xc4] ss:$16 sps:$4 sm:$0xff]   ;;  %v2346_v14 = vld [vmem:[#allocation2 + $0xc0] ss:$16 sps:$4 sm:$0xff]   ;;  %498 = vmatprep.mubr.bf16.mxu0 %v60_v18  ;;  %v2380_v21 = vld [vmem:[#allocation2 + $0x4c] ss:$16 sps:$4 sm:$0xff]  }
  0x2d   :  { %470 = vmatprep.subr.bf16.mxu0 %v2332_v4  ;;  %v2347_v17 = vld [vmem:[#allocation2 + $0xe4] ss:$16 sps:$4 sm:$0xff]   ;;  %539 = vmatprep.mubr.bf16.mxu1 %v60_v18  ;;  %v2349_v22 = vld [vmem:[#allocation2 + $0xe0] ss:$16 sps:$4 sm:$0xff]   ;;  %v2382_v24 = vld [vmem:[#allocation2 + $0x48] ss:$16 sps:$4 sm:$0xff]  }
  0x2e   :  { %v2350_v23 = vld [vmem:[#allocation2 + $0x104] ss:$16 sps:$4 sm:$0xff]   ;;  %510 = vmatpush1.bf16.msra.mxu1 %v2379_v20  ;;  %v2383_v25 = vld [vmem:[#allocation2 + $0x6c] ss:$16 sps:$4 sm:$0xff]   ;;  %v2352_v26 = vld [vmem:[#allocation2 + $0x100] ss:$16 sps:$4 sm:$0xff]  }
  0x2f   :  { %511 = vmatprep.subr.bf16.mxu1 %v2380_v21  ;;  %v2353_v27 = vld [vmem:[#allocation2 + $0x124] ss:$16 sps:$4 sm:$0xff]   ;;  %v2385_v28 = vld [vmem:[#allocation2 + $0x68] ss:$16 sps:$4 sm:$0xff]   ;;  %v2386_v29 = vld [vmem:[#allocation2 + $0x8c] ss:$16 sps:$4 sm:$0xff]  }
  0x30   :  { %471 = vmatpush1.bf16.msra.mxu0 %v2334_v5  ;;  %v2355_v30 = vld [vmem:[#allocation2 + $0x120] ss:$16 sps:$4 sm:$0xff]   ;;  %v2356_v31 = vld [vmem:[#allocation2 + $0x144] ss:$16 sps:$4 sm:$0xff]   ;;  %v2388_v32 = vld [vmem:[#allocation2 + $0x88] ss:$16 sps:$4 sm:$0xff]  }
  0x31   :  { %472 = vmatprep.subr.bf16.mxu0 %v2335_v6  ;;  %v2389_v33 = vld [vmem:[#allocation2 + $0xac] ss:$16 sps:$4 sm:$0xff]   ;;  %v2358_v34 = vld [vmem:[#allocation2 + $0x140] ss:$16 sps:$4 sm:$0xff]   ;;  %v2359_v35 = vld [vmem:[#allocation2 + $0x164] ss:$16 sps:$4 sm:$0xff]  }
  0x32   :  { %512 = vmatpush1.bf16.msra.mxu1 %v2382_v24  ;;  %v2391_v36 = vld [vmem:[#allocation2 + $0xa8] ss:$16 sps:$4 sm:$0xff]   ;;  %v2392_v37 = vld [vmem:[#allocation2 + $0xcc] ss:$16 sps:$4 sm:$0xff]   ;;  %v2361_v38 = vld [vmem:[#allocation2 + $0x160] ss:$16 sps:$4 sm:$0xff]  }
  0x33   :  { %513 = vmatprep.subr.bf16.mxu1 %v2383_v25  ;;  %v2362_v39 = vld [vmem:[#allocation2 + $0x184] ss:$16 sps:$4 sm:$0xff]   ;;  %v2394_v40 = vld [vmem:[#allocation2 + $0xc8] ss:$16 sps:$4 sm:$0xff]   ;;  %v2395_v41 = vld [vmem:[#allocation2 + $0xec] ss:$16 sps:$4 sm:$0xff]  }
  0x34   :  { %473 = vmatpush1.bf16.msra.mxu0 %v2337_v7  ;;  %v2364_v42 = vld [vmem:[#allocation2 + $0x180] ss:$16 sps:$4 sm:$0xff]   ;;  %v2365_v43 = vld [vmem:[#allocation2 + $0x1a4] ss:$16 sps:$4 sm:$0xff]   ;;  %v2397_v44 = vld [vmem:[#allocation2 + $0xe8] ss:$16 sps:$4 sm:$0xff]  }
  0x35   :  { %474 = vmatprep.subr.bf16.mxu0 %v2338_v8  ;;  %v2398_v45 = vld [vmem:[#allocation2 + $0x10c] ss:$16 sps:$4 sm:$0xff]   ;;  %v2367_v46 = vld [vmem:[#allocation2 + $0x1a0] ss:$16 sps:$4 sm:$0xff]   ;;  %v2368_v47 = vld [vmem:[#allocation2 + $0x1c4] ss:$16 sps:$4 sm:$0xff]  }
  0x36   :  { %514 = vmatpush1.bf16.msra.mxu1 %v2385_v28  ;;  %v2400_v48 = vld [vmem:[#allocation2 + $0x108] ss:$16 sps:$4 sm:$0xff]   ;;  %v2401_v49 = vld [vmem:[#allocation2 + $0x12c] ss:$16 sps:$4 sm:$0xff]   ;;  %v2370_v50 = vld [vmem:[#allocation2 + $0x1c0] ss:$16 sps:$4 sm:$0xff]  }
  0x37   :  { %515 = vmatprep.subr.bf16.mxu1 %v2386_v29  ;;  %v2371_v51 = vld [vmem:[#allocation2 + $0x1e4] ss:$16 sps:$4 sm:$0xff]   ;;  %v2403_v52 = vld [vmem:[#allocation2 + $0x128] ss:$16 sps:$4 sm:$0xff]   ;;  %v2404_v53 = vld [vmem:[#allocation2 + $0x14c] ss:$16 sps:$4 sm:$0xff]  }
  0x38   :  { %475 = vmatpush1.bf16.msra.mxu0 %v2340_v9  ;;  %v2375_v54 = vld [vmem:[#allocation2 + $0x1e0] ss:$16 sps:$4 sm:$0xff]   ;;  %v2406_v56 = vld [vmem:[#allocation2 + $0x148] ss:$16 sps:$4 sm:$0xff]   ;;  %v2424_v57 = vld [vmem:[#allocation5 + $0x4] ss:$16 sps:$4 sm:$0xff]  }
  0x39   :  { %476 = vmatprep.subr.bf16.mxu0 %v2341_v10  ;;  %v47_v55 = vld [vmem:[%s2986_s0] sm:$0x3]  ;;  %v2407_v58 = vld [vmem:[#allocation2 + $0x16c] ss:$16 sps:$4 sm:$0xff]   ;;  %v2409_v61 = vld [vmem:[#allocation2 + $0x168] ss:$16 sps:$4 sm:$0xff]  }
  0x3a   :  { %516 = vmatpush1.bf16.msra.mxu1 %v2388_v32  ;;  %v59_v59 = vpack.c.bf16 %v47_v55, %v47_v55  ;;  %v2422_v60 = vld [vmem:[#allocation5] ss:$16 sps:$4 sm:$0xff]   ;;  %v2430_v62 = vld [vmem:[#allocation5 + $0x24] ss:$16 sps:$4 sm:$0xff]   ;;  %v2410_v63 = vld [vmem:[#allocation2 + $0x18c] ss:$16 sps:$4 sm:$0xff]  }
  0x3b   :  { %517 = vmatprep.subr.bf16.mxu1 %v2389_v33  ;;  %v2428_v0 = vld [vmem:[#allocation5 + $0x20] ss:$16 sps:$4 sm:$0xff]   ;;  %v2412_v1 = vld [vmem:[#allocation2 + $0x188] ss:$16 sps:$4 sm:$0xff]   ;;  %v2436_v2 = vld [vmem:[#allocation5 + $0x44] ss:$16 sps:$4 sm:$0xff]  }
  0x3c   :  { %477 = vmatpush1.bf16.msra.mxu0 %v2343_v11  ;;  %v2413_v3 = vld [vmem:[#allocation2 + $0x1ac] ss:$16 sps:$4 sm:$0xff]   ;;  %v2434_v4 = vld [vmem:[#allocation5 + $0x40] ss:$16 sps:$4 sm:$0xff]   ;;  %v2415_v5 = vld [vmem:[#allocation2 + $0x1a8] ss:$16 sps:$4 sm:$0xff]  }
  0x3d   :  { %478 = vmatprep.subr.bf16.mxu0 %v2344_v12  ;;  %v2442_v6 = vld [vmem:[#allocation5 + $0x64] ss:$16 sps:$4 sm:$0xff]   ;;  %v2416_v7 = vld [vmem:[#allocation2 + $0x1cc] ss:$16 sps:$4 sm:$0xff]   ;;  %v2440_v8 = vld [vmem:[#allocation5 + $0x60] ss:$16 sps:$4 sm:$0xff]  }
  0x3e   :  { %518 = vmatpush1.bf16.msra.mxu1 %v2391_v36  ;;  %v2418_v9 = vld [vmem:[#allocation2 + $0x1c8] ss:$16 sps:$4 sm:$0xff]   ;;  %v2448_v10 = vld [vmem:[#allocation5 + $0x84] ss:$16 sps:$4 sm:$0xff]   ;;  %v2419_v11 = vld [vmem:[#allocation2 + $0x1ec] ss:$16 sps:$4 sm:$0xff]  }
  0x3f   :  { %519 = vmatprep.subr.bf16.mxu1 %v2392_v37  ;;  %v2421_v12 = vld [vmem:[#allocation2 + $0x1e8] ss:$16 sps:$4 sm:$0xff]   ;;  %v2446_v13 = vld [vmem:[#allocation5 + $0x80] ss:$16 sps:$4 sm:$0xff]   ;;  %v2454_v15 = vld [vmem:[#allocation5 + $0xa4] ss:$16 sps:$4 sm:$0xff]  }
  0x40   :  { %479 = vmatpush1.bf16.msra.mxu0 %v2346_v14  ;;  %v2427_v14 = vld [vmem:[#allocation5 + $0xc] ss:$16 sps:$4 sm:$0xff]   ;;  %v2452_v16 = vld [vmem:[#allocation5 + $0xa0] ss:$16 sps:$4 sm:$0xff]   ;;  %v2460_v18 = vld [vmem:[#allocation5 + $0xc4] ss:$16 sps:$4 sm:$0xff]  }
  0x41   :  { %480 = vmatprep.subr.bf16.mxu0 %v2347_v17  ;;  %v2425_v17 = vld [vmem:[#allocation5 + $0x8] ss:$16 sps:$4 sm:$0xff]   ;;  %v2433_v19 = vld [vmem:[#allocation5 + $0x2c] ss:$16 sps:$4 sm:$0xff]   ;;  %v2458_v20 = vld [vmem:[#allocation5 + $0xc0] ss:$16 sps:$4 sm:$0xff]  }
  0x42   :  { %520 = vmatpush1.bf16.msra.mxu1 %v2394_v40  ;;  %v2431_v21 = vld [vmem:[#allocation5 + $0x28] ss:$16 sps:$4 sm:$0xff]   ;;  %v2464_v24 = vld [vmem:[#allocation5 + $0xe0] ss:$16 sps:$4 sm:$0xff]   ;;  %vm1513_vm0 = vcmask 1041408   ;;  %s2732_s8 = smov 118  }
  0x43   :  { %521 = vmatprep.subr.bf16.mxu1 %v2395_v41  ;;  %v2437_v25 = vld [vmem:[#allocation5 + $0x48] ss:$16 sps:$4 sm:$0xff]   ;;  %v2470_v28 = vld [vmem:[#allocation5 + $0x100] ss:$16 sps:$4 sm:$0xff]   ;;  %s2733_s11 = smov [#allocation7]   ;;  %vm2018_vm1 = vcmask 74752  }
  0x44   :  { %481 = vmatpush1.bf16.msra.mxu0 %v2349_v22  ;;  %v2466_v22 = vld [vmem:[#allocation5 + $0xe4] ss:$16 sps:$4 sm:$0xff]   ;;  %v2443_v29 = vld [vmem:[#allocation5 + $0x68] ss:$16 sps:$4 sm:$0xff]   ;;  %v2476_v32 = vld [vmem:[#allocation5 + $0x120] ss:$16 sps:$4 sm:$0xff]  }
  0x45   :  { %482 = vmatprep.subr.bf16.mxu0 %v2350_v23  ;;  %v2439_v23 = vld [vmem:[#allocation5 + $0x4c] ss:$16 sps:$4 sm:$0xff]   ;;  %v2449_v33 = vld [vmem:[#allocation5 + $0x88] ss:$16 sps:$4 sm:$0xff]   ;;  %v2482_v36 = vld [vmem:[#allocation5 + $0x140] ss:$16 sps:$4 sm:$0xff]  }
  0x46   :  { %522 = vmatpush1.bf16.msra.mxu1 %v2397_v44  ;;  %v2455_v37 = vld [vmem:[#allocation5 + $0xa8] ss:$16 sps:$4 sm:$0xff]   ;;  %v2488_v40 = vld [vmem:[#allocation5 + $0x160] ss:$16 sps:$4 sm:$0xff]   ;;  %s2026_s12 = sshll.u32 %s2733_s11, 4  ;;  %s2027_s12 = int_to_ptr.vmem [resolvable:$true] %s2026_s12 }
  0x47   :  { %523 = vmatprep.subr.bf16.mxu1 %v2398_v45  ;;  %v2461_v41 = vld [vmem:[#allocation5 + $0xc8] ss:$16 sps:$4 sm:$0xff]   ;;  %v2494_v44 = vld [vmem:[#allocation5 + $0x180] ss:$16 sps:$4 sm:$0xff]   ;;  %s2700_s1 = scalar_lea.vmem %s2027_s12, 32  ;;  %p2705_p3 = scmp.lt.s32.totalorder %s2027_s12, %s2027_s12 }
  0x48   :  { %483 = vmatpush1.bf16.msra.mxu0 %v2352_v26  ;;  %v2472_v26 = vld [vmem:[#allocation5 + $0x104] ss:$16 sps:$4 sm:$0xff]   ;;  %v2467_v45 = vld [vmem:[#allocation5 + $0xe8] ss:$16 sps:$4 sm:$0xff]   ;;  %p2701_p2 = scmp.ne.s32.totalorder %s2027_s12, %s2700_s1  ;;  %p2706_p4 = scmp.lt.s32.totalorder %s2700_s1, %s2700_s1 }
  0x49   :  { %484 = vmatprep.subr.bf16.mxu0 %v2353_v27  ;;  %v2445_v27 = vld [vmem:[#allocation5 + $0x6c] ss:$16 sps:$4 sm:$0xff]   ;;  %v2491_v55 = vld [vmem:[#allocation5 + $0x168] ss:$16 sps:$4 sm:$0xff]  }
  0x4a   :  { %524 = vmatpush1.bf16.msra.mxu1 %v2400_v48  ;;  %v2500_v48 = vld [vmem:[#allocation5 + $0x1a0] ss:$16 sps:$4 sm:$0xff]   ;;  %p2707_p5 = por %p2706_p4, %p2705_p3 }
  0x4b   :  { %525 = vmatprep.subr.bf16.mxu1 %v2401_v49  ;;  %v2473_v49 = vld [vmem:[#allocation5 + $0x108] ss:$16 sps:$4 sm:$0xff]  }
  0x4c   :  { %485 = vmatpush1.bf16.msra.mxu0 %v2355_v30  ;;  %v2478_v30 = vld [vmem:[#allocation5 + $0x124] ss:$16 sps:$4 sm:$0xff]   ;;  %p2708_p6 = pnand %p2707_p5, %p2701_p2 }
  0x4d   :  { %486 = vmatprep.subr.bf16.mxu0 %v2356_v31  ;;  %v2451_v31 = vld [vmem:[#allocation5 + $0x8c] ss:$16 sps:$4 sm:$0xff]  }
  0x4e   :  { %526 = vmatpush1.bf16.msra.mxu1 %v2403_v52  ;;  %v2487_v52 = vld [vmem:[#allocation5 + $0x14c] ss:$16 sps:$4 sm:$0xff]  }
  0x4f   :  { %527 = vmatprep.subr.bf16.mxu1 %v2404_v53  ;;  %v2485_v53 = vld [vmem:[#allocation5 + $0x148] ss:$16 sps:$4 sm:$0xff]  }
  0x50   :  { %487 = vmatpush1.bf16.msra.mxu0 %v2358_v34  ;;  %v2484_v34 = vld [vmem:[#allocation5 + $0x144] ss:$16 sps:$4 sm:$0xff]  }
  0x51   :  { %488 = vmatprep.subr.bf16.mxu0 %v2359_v35  ;;  %v2457_v35 = vld [vmem:[#allocation5 + $0xac] ss:$16 sps:$4 sm:$0xff]  }
  0x52   :  { %528 = vmatpush1.bf16.msra.mxu1 %v2406_v56  ;;  %v2499_v56 = vld [vmem:[#allocation5 + $0x18c] ss:$16 sps:$4 sm:$0xff]  }
  0x53   :  { %529 = vmatprep.subr.bf16.mxu1 %v2407_v58  ;;  %v2505_v58 = vld [vmem:[#allocation5 + $0x1ac] ss:$16 sps:$4 sm:$0xff]  }
  0x54   :  { %489 = vmatpush1.bf16.msra.mxu0 %v2361_v38  ;;  %v2490_v38 = vld [vmem:[#allocation5 + $0x164] ss:$16 sps:$4 sm:$0xff]  }
  0x55   :  { %490 = vmatprep.subr.bf16.mxu0 %v2362_v39  ;;  %v2463_v39 = vld [vmem:[#allocation5 + $0xcc] ss:$16 sps:$4 sm:$0xff]  }
  0x56   :  { %530 = vmatpush1.bf16.msra.mxu1 %v2409_v61  ;;  %v2511_v61 = vld [vmem:[#allocation5 + $0x1cc] ss:$16 sps:$4 sm:$0xff]  }
  0x57   :  { %531 = vmatprep.subr.bf16.mxu1 %v2410_v63  ;;  %v2509_v63 = vld [vmem:[#allocation5 + $0x1c8] ss:$16 sps:$4 sm:$0xff]  }
  0x58   :  { %491 = vmatpush1.bf16.msra.mxu0 %v2364_v42  ;;  %v2496_v42 = vld [vmem:[#allocation5 + $0x184] ss:$16 sps:$4 sm:$0xff]  }
  0x59   :  { %492 = vmatprep.subr.bf16.mxu0 %v2365_v43  ;;  %v2469_v43 = vld [vmem:[#allocation5 + $0xec] ss:$16 sps:$4 sm:$0xff]  }
  0x5a   :  { %532 = vmatpush1.bf16.msra.mxu1 %v2412_v1  ;;  %v2517_v1 = vld [vmem:[#allocation5 + $0x1ec] ss:$16 sps:$4 sm:$0xff]  }
  0x5b   :  { %533 = vmatprep.subr.bf16.mxu1 %v2413_v3  ;;  %v2515_v3 = vld [vmem:[#allocation5 + $0x1e8] ss:$16 sps:$4 sm:$0xff]  }
  0x5c   :  { %493 = vmatpush1.bf16.msra.mxu0 %v2367_v46  ;;  %v2502_v46 = vld [vmem:[#allocation5 + $0x1a4] ss:$16 sps:$4 sm:$0xff]  }
  0x5d   :  { %494 = vmatprep.subr.bf16.mxu0 %v2368_v47  ;;  %v2475_v47 = vld [vmem:[#allocation5 + $0x10c] ss:$16 sps:$4 sm:$0xff]  }
  0x5e   :  { %534 = vmatpush1.bf16.msra.mxu1 %v2415_v5  ;;  %v2523_v5 = vld [vmem:[#allocation5 + $0x20c] ss:$16 sps:$4 sm:$0xff]  }
  0x5f   :  { %535 = vmatprep.subr.bf16.mxu1 %v2416_v7 }
  0x60   :  { %495 = vmatpush1.bf16.msra.mxu0 %v2370_v50  ;;  %v2481_v50 = vld [vmem:[#allocation5 + $0x12c] ss:$16 sps:$4 sm:$0xff]  }
  0x61   :  { %496 = vmatprep.subr.bf16.mxu0 %v2371_v51  ;;  %v2479_v51 = vld [vmem:[#allocation5 + $0x128] ss:$16 sps:$4 sm:$0xff]  }
  0x62   :  { %536 = vmatpush1.bf16.msra.mxu1 %v2418_v9  ;;  %v2797_v9 = vld [vmem:[%s2986_s0 + $0x2] ss:$8 sm:$0xf] }
  0x63   :  { %537 = vmatprep.subr.bf16.mxu1 %v2419_v11 }
  0x64   :  { %497 = vmatpush1.bf16.msra.mxu0 %v2375_v54  ;;  %v2493_v54 = vld [vmem:[#allocation5 + $0x16c] ss:$16 sps:$4 sm:$0xff]  }
  0x65   :  { %1349 = vmatprep.subr.bf16.mxu0 %v2424_v57  ;;  %v2497_v57 = vld [vmem:[#allocation5 + $0x188] ss:$16 sps:$4 sm:$0xff]  }
  0x66   :  { %538 = vmatpush1.bf16.msra.mxu1 %v2421_v12 }
  0x67   :  { %499 = vmatmul.mubr.bf16.vlgmr.msra.gmra.mrb[0].mxu0 %v59_v59  ;;  %1431 = vmatprep.subr.bf16.mxu1 %v2427_v14 }
  0x68   :  { %1350 = vmatpush1.bf16.msra.mxu0 %v2422_v60  ;;  %v2508_v60 = vld [vmem:[#allocation5 + $0x1c4] ss:$16 sps:$4 sm:$0xff]  }
  0x69   :  { %1351 = vmatprep.subr.bf16.mxu0 %v2430_v62  ;;  %540 = vmatmul.mubr.bf16.vlgmr.msra.gmra.mrb[0].mxu1 %v59_v59  ;;  %v2503_v59 = vld [vmem:[#allocation5 + $0x1a8] ss:$16 sps:$4 sm:$0xff]   ;;  %v2506_v62 = vld [vmem:[#allocation5 + $0x1c0] ss:$16 sps:$4 sm:$0xff]  }
  0x6a   :  { %1432 = vmatpush1.bf16.msra.mxu1 %v2425_v17 }
  0x6b   :  { %1433 = vmatprep.subr.bf16.mxu1 %v2433_v19 }
  0x6c   :  { %1352 = vmatpush1.bf16.msra.mxu0 %v2428_v0  ;;  %v2514_v0 = vld [vmem:[#allocation5 + $0x1e4] ss:$16 sps:$4 sm:$0xff]  }
  0x6d   :  { %1353 = vmatprep.subr.bf16.mxu0 %v2436_v2  ;;  %v2512_v2 = vld [vmem:[#allocation5 + $0x1e0] ss:$16 sps:$4 sm:$0xff]  }
  0x6e   :  { %1434 = vmatpush1.bf16.msra.mxu1 %v2431_v21 }
  0x6f   :  { %1435 = vmatprep.subr.bf16.mxu1 %v2439_v23 }
  0x70   :  { %1354 = vmatpush1.bf16.msra.mxu0 %v2434_v4  ;;  %v2520_v4 = vld [vmem:[#allocation5 + $0x204] ss:$16 sps:$4 sm:$0xff]  }
  0x71   :  { %1355 = vmatprep.subr.bf16.mxu0 %v2442_v6  ;;  %v126_v6 = vlaneseq }
  0x72   :  { %1436 = vmatpush1.bf16.msra.mxu1 %v2437_v25  ;;  %v2521_v25 = vld [vmem:[#allocation5 + $0x208] ss:$16 sps:$4 sm:$0xff]  }
  0x73   :  { %1437 = vmatprep.subr.bf16.mxu1 %v2445_v27  ;;  %v2789_v7 = vshrl.u32 %v126_v6, 7  ;;  %v2526_v27 = vld [vmem:[#allocation5 + $0x224] ss:$16 sps:$4 sm:$0xff]   ;;  %v2577_v6 = vld [vmem:[#allocation5 + $0x32c] ss:$16 sps:$4 sm:$0xff]  }
  0x74   :  { %1356 = vmatpush1.bf16.msra.mxu0 %v2440_v8 }
  0x75   :  { %1357 = vmatprep.subr.bf16.mxu0 %v2448_v10  ;;  %v2792_v8 = vsub.s32 0, %v2789_v7  ;;  %v2800_v10 = vsub.s32 1, %v2789_v7 }
  0x76   :  { %1438 = vmatpush1.bf16.msra.mxu1 %v2443_v29  ;;  %v2524_v29 = vld [vmem:[#allocation5 + $0x220] ss:$16 sps:$4 sm:$0xff]  }
  0x77   :  { %1439 = vmatprep.subr.bf16.mxu1 %v2451_v31  ;;  %v129_v11 = vrot.slane %v2797_v9, %v2792_v8  ;;  %v133_v12 = vrot.slane %v2797_v9, %v2800_v10  ;;  %v2532_v31 = vld [vmem:[#allocation5 + $0x244] ss:$16 sps:$4 sm:$0xff]  }
  0x78   :  { %1358 = vmatpush1.bf16.msra.mxu0 %v2446_v13 }
  0x79   :  { %1359 = vmatprep.subr.bf16.mxu0 %v2454_v15 }
  0x7a   :  { %1440 = vmatpush1.bf16.msra.mxu1 %v2449_v33  ;;  %v2807_v33 = vsub.s32 3, %v2789_v7 }
  0x7b   :  { %1441 = vmatprep.subr.bf16.mxu1 %v2457_v35  ;;  %v2533_v35 = vld [vmem:[#allocation5 + $0x248] ss:$16 sps:$4 sm:$0xff]  }
  0x7c   :  { %1360 = vmatpush1.bf16.msra.mxu0 %v2452_v16 }
  0x7d   :  { %1361 = vmatprep.subr.bf16.mxu0 %v2460_v18 }
  0x7e   :  { %1442 = vmatpush1.bf16.msra.mxu1 %v2455_v37  ;;  %v2541_v37 = vld [vmem:[#allocation5 + $0x26c] ss:$16 sps:$4 sm:$0xff]  }
  0x7f   :  { %1443 = vmatprep.subr.bf16.mxu1 %v2463_v39  ;;  %v2536_v39 = vld [vmem:[#allocation5 + $0x260] ss:$16 sps:$4 sm:$0xff]  }
  0x80   :  { %1362 = vmatpush1.bf16.msra.mxu0 %v2458_v20 }
  0x81   :  { %1363 = vmatprep.subr.bf16.mxu0 %v2466_v22 }
  0x82   :  { %1444 = vmatpush1.bf16.msra.mxu1 %v2461_v41  ;;  %v2544_v41 = vld [vmem:[#allocation5 + $0x284] ss:$16 sps:$4 sm:$0xff]  }
  0x83   :  { %1445 = vmatprep.subr.bf16.mxu1 %v2469_v43 }
  0x84   :  { %1364 = vmatpush1.bf16.msra.mxu0 %v2464_v24  ;;  %v2518_v24 = vld [vmem:[#allocation5 + $0x200] ss:$16 sps:$4 sm:$0xff]  }
  0x85   :  { %1365 = vmatprep.subr.bf16.mxu0 %v2472_v26 }
  0x86   :  { %1446 = vmatpush1.bf16.msra.mxu1 %v2467_v45 }
  0x87   :  { %1447 = vmatprep.subr.bf16.mxu1 %v2475_v47  ;;  %v2542_v47 = vld [vmem:[#allocation5 + $0x280] ss:$16 sps:$4 sm:$0xff]  }
  0x88   :  { %1366 = vmatpush1.bf16.msra.mxu0 %v2470_v28  ;;  %v2529_v28 = vld [vmem:[#allocation5 + $0x22c] ss:$16 sps:$4 sm:$0xff]  }
  0x89   :  { %1367 = vmatprep.subr.bf16.mxu0 %v2478_v30  ;;  %v2527_v30 = vld [vmem:[#allocation5 + $0x228] ss:$16 sps:$4 sm:$0xff]  }
  0x8a   :  { %1448 = vmatpush1.bf16.msra.mxu1 %v2473_v49 }
  0x8b   :  { %1449 = vmatprep.subr.bf16.mxu1 %v2481_v50  ;;  %v2550_v50 = vld [vmem:[#allocation5 + $0x2a4] ss:$16 sps:$4 sm:$0xff]  }
  0x8c   :  { %1368 = vmatpush1.bf16.msra.mxu0 %v2476_v32  ;;  %v2535_v32 = vld [vmem:[#allocation5 + $0x24c] ss:$16 sps:$4 sm:$0xff]  }
  0x8d   :  { %1369 = vmatprep.subr.bf16.mxu0 %v2484_v34  ;;  %v2530_v34 = vld [vmem:[#allocation5 + $0x240] ss:$16 sps:$4 sm:$0xff]  }
  0x8e   :  { %1450 = vmatpush1.bf16.msra.mxu1 %v2479_v51  ;;  %v2553_v51 = vld [vmem:[#allocation5 + $0x2ac] ss:$16 sps:$4 sm:$0xff]  }
  0x8f   :  { %1451 = vmatprep.subr.bf16.mxu1 %v2487_v52 }
  0x90   :  { %1370 = vmatpush1.bf16.msra.mxu0 %v2482_v36  ;;  %v2538_v36 = vld [vmem:[#allocation5 + $0x264] ss:$16 sps:$4 sm:$0xff]  }
  0x91   :  { %1371 = vmatprep.subr.bf16.mxu0 %v2490_v38  ;;  %v141_v38 = vrot.slane %v2797_v9, %v2807_v33 }
  0x92   :  { %1452 = vmatpush1.bf16.msra.mxu1 %v2485_v53 }
  0x93   :  { %1453 = vmatprep.subr.bf16.mxu1 %v2493_v54  ;;  %v2548_v54 = vld [vmem:[#allocation5 + $0x2a0] ss:$16 sps:$4 sm:$0xff]  }
  0x94   :  { %1372 = vmatpush1.bf16.msra.mxu0 %v2488_v40  ;;  %v2539_v40 = vld [vmem:[#allocation5 + $0x268] ss:$16 sps:$4 sm:$0xff]  }
  0x95   :  { %1373 = vmatprep.subr.bf16.mxu0 %v2496_v42  ;;  %v2547_v42 = vld [vmem:[#allocation5 + $0x28c] ss:$16 sps:$4 sm:$0xff]  }
  0x96   :  { %1454 = vmatpush1.bf16.msra.mxu1 %v2491_v55  ;;  %v2551_v55 = vld [vmem:[#allocation5 + $0x2a8] ss:$16 sps:$4 sm:$0xff]  }
  0x97   :  { %1455 = vmatprep.subr.bf16.mxu1 %v2499_v56  ;;  %v2556_v56 = vld [vmem:[#allocation5 + $0x2c4] ss:$16 sps:$4 sm:$0xff]  }
  0x98   :  { %1374 = vmatpush1.bf16.msra.mxu0 %v2494_v44 }
  0x99   :  { %1375 = vmatprep.subr.bf16.mxu0 %v2502_v46 }
  0x9a   :  { %1456 = vmatpush1.bf16.msra.mxu1 %v2497_v57  ;;  %v2559_v57 = vld [vmem:[#allocation5 + $0x2cc] ss:$16 sps:$4 sm:$0xff]  }
  0x9b   :  { %1457 = vmatprep.subr.bf16.mxu1 %v2505_v58 }
  0x9c   :  { %1376 = vmatpush1.bf16.msra.mxu0 %v2500_v48  ;;  %v2545_v48 = vld [vmem:[#allocation5 + $0x288] ss:$16 sps:$4 sm:$0xff]  }
  0x9d   :  { %1377 = vmatprep.subr.bf16.mxu0 %v2508_v60  ;;  %v2557_v60 = vld [vmem:[#allocation5 + $0x2c8] ss:$16 sps:$4 sm:$0xff]  }
  0x9e   :  { %1458 = vmatpush1.bf16.msra.mxu1 %v2503_v59  ;;  %v2554_v59 = vld [vmem:[#allocation5 + $0x2c0] ss:$16 sps:$4 sm:$0xff]  }
  0x9f   :  { %1459 = vmatprep.subr.bf16.mxu1 %v2511_v61  ;;  %v2562_v61 = vld [vmem:[#allocation5 + $0x2e4] ss:$16 sps:$4 sm:$0xff]  }
  0xa0   :  { %1378 = vmatpush1.bf16.msra.mxu0 %v2506_v62  ;;  %v2565_v62 = vld [vmem:[#allocation5 + $0x2ec] ss:$16 sps:$4 sm:$0xff]  }
  0xa1   :  { %1379 = vmatprep.subr.bf16.mxu0 %v2514_v0  ;;  %v2563_v0 = vld [vmem:[#allocation5 + $0x2e8] ss:$16 sps:$4 sm:$0xff]  }
  0xa2   :  { %1460 = vmatpush1.bf16.msra.mxu1 %v2509_v63  ;;  %v2560_v63 = vld [vmem:[#allocation5 + $0x2e0] ss:$16 sps:$4 sm:$0xff]  }
  0xa3   :  { %1461 = vmatprep.subr.bf16.mxu1 %v2517_v1  ;;  %v2568_v1 = vld [vmem:[#allocation5 + $0x304] ss:$16 sps:$4 sm:$0xff]  }
  0xa4   :  { %1380 = vmatpush1.bf16.msra.mxu0 %v2512_v2  ;;  %v2571_v2 = vld [vmem:[#allocation5 + $0x30c] ss:$16 sps:$4 sm:$0xff]  }
  0xa5   :  { %1390 = vmatprep.subr.bf16.mxu0 %v2520_v4  ;;  %v2569_v4 = vld [vmem:[#allocation5 + $0x308] ss:$16 sps:$4 sm:$0xff]  }
  0xa6   :  { %1462 = vmatpush1.bf16.msra.mxu1 %v2515_v3  ;;  %v2566_v3 = vld [vmem:[#allocation5 + $0x300] ss:$16 sps:$4 sm:$0xff]  }
  0xa7   :  { %1472 = vmatprep.subr.bf16.mxu1 %v2523_v5  ;;  %v2574_v5 = vld [vmem:[#allocation5 + $0x324] ss:$16 sps:$4 sm:$0xff]  }
 0x13a   :  { %v500_v13 = vpop.f32.mrb[0].mxu0 }
 0x13b   :  { %v501_v14 = vadd.f32 %v500_v13, %v129_v11  ;;  %v502_v15 = vpop.f32.mrb[1].mxu0  ;;  %v2572_v11 = vld [vmem:[#allocation5 + $0x320] ss:$16 sps:$4 sm:$0xff]   ;;  %v2580_v13 = vld [vmem:[#allocation5 + $0x344] ss:$16 sps:$4 sm:$0xff]  }
 0x13c   :  { %v503_v16 = vadd.f32 %v502_v15, %v133_v12  ;;  %v504_v17 = vpop.f32.mrb[2].mxu0  ;;  %v2811_v43 = vpop.f32.mrb[0].mxu1  ;;  %v2575_v12 = vld [vmem:[#allocation5 + $0x328] ss:$16 sps:$4 sm:$0xff]   ;;  %v2578_v15 = vld [vmem:[#allocation5 + $0x340] ss:$16 sps:$4 sm:$0xff]  }
 0x13d   :  { %v548_v18 = vmul.f32 0.2, %v501_v14  ;;  %v505_v19 = vpop.f32.mrb[3].mxu0  ;;  %v543_v44 = vpop.f32.mrb[1].mxu1  ;;  %v2586_v17 = vld [vmem:[#allocation5 + $0x364] ss:$16 sps:$4 sm:$0xff]  }
 0x13e   :  { %v549_v20 = vmul.f32 0.2, %v503_v16  ;;  %v544_v45 = vadd.f32 %v543_v44, %v141_v38  ;;  %v545_v46 = vpop.f32.mrb[2].mxu1  ;;  %v2584_v19 = vld [vmem:[#allocation5 + $0x360] ss:$16 sps:$4 sm:$0xff]  }
 0x13f   :  { %v552_v21 = vmax.f32 %v501_v14, %v548_v18  ;;  %v546_v49 = vpop.f32.mrb[3].mxu1  ;;  %v2583_v14 = vld [vmem:[#allocation5 + $0x34c] ss:$16 sps:$4 sm:$0xff]   ;;  %v2608_v38 = vld [vmem:[#allocation5 + $0x3e0] ss:$16 sps:$4 sm:$0xff]  }
 0x140   :  { %v553_v22 = vmax.f32 %v503_v16, %v549_v20  ;;  %v551_v52 = vmul.f32 0.2, %v544_v45  ;;  %v2581_v16 = vld [vmem:[#allocation5 + $0x348] ss:$16 sps:$4 sm:$0xff]   ;;  %v2589_v18 = vld [vmem:[#allocation5 + $0x36c] ss:$16 sps:$4 sm:$0xff]  }
 0x141   :  { %v556_v26 = vpack.c.bf16 %v552_v21, %v552_v21  ;;  %v2587_v20 = vld [vmem:[#allocation5 + $0x368] ss:$16 sps:$4 sm:$0xff]   ;;  %v2592_v21 = vld [vmem:[#allocation5 + $0x384] ss:$16 sps:$4 sm:$0xff]  }
 0x142   :  { %v557_v23 = vpack.c.bf16 %v553_v22, %v553_v22  ;;  %v555_v53 = vmax.f32 %v544_v45, %v551_v52  ;;  %v2595_v22 = vld [vmem:[#allocation5 + $0x38c] ss:$16 sps:$4 sm:$0xff]   ;;  %v2616_v44 = vld [vmem:[%s2989_s3] sm:$0xff]   ;;  %v2624_v52 = vld [vmem:[%s2989_s3 + $0x10] sm:$0xff]  }
 0x143   :  { %v2617_v45 = vld [vmem:[%s2989_s3 + $0x80] sm:$0xff]   ;;  %v2618_v46 = vld [vmem:[%s2989_s3 + $0x48] sm:$0xff]  }
 0x144   :  { %1381 = vmatprep.mubr.bf16.mxu0 %v557_v23  ;;  %1463 = vmatprep.mubr.bf16.mxu1 %v557_v23  ;;  %v559_v58 = vpack.c.bf16 %v555_v53, %v555_v53  ;;  %v2814_v23 = vsub.s32 2, %v2789_v7  ;;  %v2604_v7 = vld [vmem:[#allocation5 + $0x3c4] ss:$16 sps:$4 sm:$0xff]   ;;  %v2621_v49 = vld [vmem:[%s2989_s3 + $0x88] sm:$0xff]  }
 0x145   :  { %1382 = vmatmul.mubr.bf16.vlgmr.msra.gmra.mrb[4].mxu0 %v556_v26  ;;  %1464 = vmatmul.mubr.bf16.vlgmr.msra.gmra.mrb[4].mxu1 %v556_v26  ;;  %v2625_v53 = vld [vmem:[%s2989_s3 + $0x90] sm:$0xff]  }
 0x146   :  { %1391 = vmatpush1.bf16.msra.mxu0 %v2518_v24  ;;  %1473 = vmatpush1.bf16.msra.mxu1 %v2521_v25  ;;  %v2590_v24 = vld [vmem:[#allocation5 + $0x380] ss:$16 sps:$4 sm:$0xff]   ;;  %v2593_v25 = vld [vmem:[#allocation5 + $0x388] ss:$16 sps:$4 sm:$0xff]   ;;  %v137_v26 = vrot.slane %v2797_v9, %v2814_v23  ;;  %v2610_v9 = vld [vmem:[#allocation5 + $0x3e4] ss:$16 sps:$4 sm:$0xff]  }
 0x147   :  { %1392 = vmatprep.subr.bf16.mxu0 %v2526_v27  ;;  %1474 = vmatprep.subr.bf16.mxu1 %v2529_v28  ;;  %v2598_v27 = vld [vmem:[#allocation5 + $0x3a4] ss:$16 sps:$4 sm:$0xff]   ;;  %v2601_v28 = vld [vmem:[#allocation5 + $0x3ac] ss:$16 sps:$4 sm:$0xff]  }
 0x148   :  { %1422 = vmatprep.mubr.bf16.mxu0 %v559_v58  ;;  %1504 = vmatprep.mubr.bf16.mxu1 %v559_v58  ;;  %v2630_v58 = vld [vmem:[%s2989_s3 + $0x60] sm:$0xff]  }
 0x14a   :  { %1393 = vmatpush1.bf16.msra.mxu0 %v2524_v29  ;;  %1475 = vmatpush1.bf16.msra.mxu1 %v2527_v30  ;;  %v2596_v29 = vld [vmem:[#allocation5 + $0x3a0] ss:$16 sps:$4 sm:$0xff]   ;;  %v2599_v30 = vld [vmem:[#allocation5 + $0x3a8] ss:$16 sps:$4 sm:$0xff]  }
 0x14b   :  { %1394 = vmatprep.subr.bf16.mxu0 %v2532_v31  ;;  %1476 = vmatprep.subr.bf16.mxu1 %v2535_v32  ;;  %v542_v31 = vadd.f32 %v2811_v43, %v137_v26  ;;  %v2607_v32 = vld [vmem:[#allocation5 + $0x3cc] ss:$16 sps:$4 sm:$0xff]   ;;  %v2615_v43 = vld [vmem:[%s2989_s3 + $0xc0] sm:$0xff]  }
 0x14e   :  { %1395 = vmatpush1.bf16.msra.mxu0 %v2530_v34  ;;  %1477 = vmatpush1.bf16.msra.mxu1 %v2533_v35  ;;  %v2602_v34 = vld [vmem:[#allocation5 + $0x3c0] ss:$16 sps:$4 sm:$0xff]   ;;  %v2605_v35 = vld [vmem:[#allocation5 + $0x3c8] ss:$16 sps:$4 sm:$0xff]  }
 0x14f   :  { %1396 = vmatprep.subr.bf16.mxu0 %v2538_v36  ;;  %1478 = vmatprep.subr.bf16.mxu1 %v2541_v37  ;;  %v550_v36 = vmul.f32 0.2, %v542_v31  ;;  %v2613_v37 = vld [vmem:[#allocation5 + $0x3ec] ss:$16 sps:$4 sm:$0xff]  }
 0x152   :  { %1397 = vmatpush1.bf16.msra.mxu0 %v2536_v39  ;;  %1479 = vmatpush1.bf16.msra.mxu1 %v2539_v40  ;;  %v2611_v39 = vld [vmem:[#allocation5 + $0x3e8] ss:$16 sps:$4 sm:$0xff]   ;;  %v554_v40 = vmax.f32 %v542_v31, %v550_v36 }
 0x153   :  { %1398 = vmatprep.subr.bf16.mxu0 %v2544_v41  ;;  %1480 = vmatprep.subr.bf16.mxu1 %v2547_v42  ;;  %v2614_v42 = vld [vmem:[%s2989_s3 + $0x40] sm:$0xff]  }
 0x154   :  { %v558_v41 = vpack.c.bf16 %v554_v40, %v554_v40 }
 0x156   :  { %1399 = vmatpush1.bf16.msra.mxu0 %v2542_v47  ;;  %1481 = vmatpush1.bf16.msra.mxu1 %v2545_v48  ;;  %v2619_v47 = vld [vmem:[%s2989_s3 + $0xc8] sm:$0xff]  }
 0x157   :  { %1400 = vmatprep.subr.bf16.mxu0 %v2550_v50  ;;  %1482 = vmatprep.subr.bf16.mxu1 %v2553_v51  ;;  %v2620_v48 = vld [vmem:[%s2989_s3 + $0x8] sm:$0xff]   ;;  %v2622_v50 = vld [vmem:[%s2989_s3 + $0x50] sm:$0xff]  }
 0x158   :  { %v2623_v51 = vld [vmem:[%s2989_s3 + $0xd0] sm:$0xff]  }
 0x15a   :  { %1401 = vmatpush1.bf16.msra.mxu0 %v2548_v54  ;;  %1483 = vmatpush1.bf16.msra.mxu1 %v2551_v55  ;;  %v2626_v54 = vld [vmem:[%s2989_s3 + $0x58] sm:$0xff]  }
 0x15b   :  { %1402 = vmatprep.subr.bf16.mxu0 %v2556_v56  ;;  %1484 = vmatprep.subr.bf16.mxu1 %v2559_v57  ;;  %v2627_v55 = vld [vmem:[%s2989_s3 + $0xd8] sm:$0xff]  }
 0x15c   :  { %v2628_v56 = vld [vmem:[%s2989_s3 + $0x18] sm:$0xff]  }
 0x15d   :  { %v2629_v57 = vld [vmem:[%s2989_s3 + $0x98] sm:$0xff]  }
 0x15e   :  { %1403 = vmatpush1.bf16.msra.mxu0 %v2554_v59  ;;  %1485 = vmatpush1.bf16.msra.mxu1 %v2557_v60  ;;  %v2631_v59 = vld [vmem:[%s2989_s3 + $0xe0] sm:$0xff]  }
 0x15f   :  { %1404 = vmatprep.subr.bf16.mxu0 %v2562_v61  ;;  %1486 = vmatprep.subr.bf16.mxu1 %v2565_v62  ;;  %v2632_v60 = vld [vmem:[%s2989_s3 + $0x20] sm:$0xff]   ;;  %v2634_v62 = vld [vmem:[%s2989_s3 + $0x68] sm:$0xff]  }
 0x160   :  { %v2633_v61 = vld [vmem:[%s2989_s3 + $0xa0] sm:$0xff]  }
 0x162   :  { %1405 = vmatpush1.bf16.msra.mxu0 %v2560_v63  ;;  %1487 = vmatpush1.bf16.msra.mxu1 %v2563_v0  ;;  %v2635_v63 = vld [vmem:[%s2989_s3 + $0xe8] sm:$0xff]  }
 0x163   :  { %1406 = vmatprep.subr.bf16.mxu0 %v2568_v1  ;;  %1488 = vmatprep.subr.bf16.mxu1 %v2571_v2  ;;  %v2636_v0 = vld [vmem:[%s2989_s3 + $0x28] sm:$0xff]   ;;  %v2638_v2 = vld [vmem:[%s2989_s3 + $0x70] sm:$0xff]  }
 0x164   :  { %v2637_v1 = vld [vmem:[%s2989_s3 + $0xa8] sm:$0xff]  }
 0x166   :  { %1407 = vmatpush1.bf16.msra.mxu0 %v2566_v3  ;;  %1489 = vmatpush1.bf16.msra.mxu1 %v2569_v4  ;;  %v2639_v3 = vld [vmem:[%s2989_s3 + $0xf0] sm:$0xff]  }
 0x167   :  { %1408 = vmatprep.subr.bf16.mxu0 %v2574_v5  ;;  %1490 = vmatprep.subr.bf16.mxu1 %v2577_v6  ;;  %v2640_v4 = vld [vmem:[%s2989_s3 + $0x30] sm:$0xff]   ;;  %v2642_v6 = vld [vmem:[%s2989_s3 + $0x78] sm:$0xff]  }
 0x168   :  { %v2641_v5 = vld [vmem:[%s2989_s3 + $0xb0] sm:$0xff]  }
 0x16a   :  { %1409 = vmatpush1.bf16.msra.mxu0 %v2572_v11  ;;  %1491 = vmatpush1.bf16.msra.mxu1 %v2575_v12  ;;  %v2643_v11 = vld [vmem:[%s2989_s3 + $0xf8] sm:$0xff]  }
 0x16b   :  { %1410 = vmatprep.subr.bf16.mxu0 %v2580_v13  ;;  %1492 = vmatprep.subr.bf16.mxu1 %v2583_v14  ;;  %v2644_v12 = vld [vmem:[%s2989_s3 + $0x38] sm:$0xff]  }
 0x16c   :  { %v2645_v13 = vld [vmem:[%s2989_s3 + $0xb8] sm:$0xff]  }
 0x16d   :  { %v2037_v14 = vld [vmem:[%s2986_s0 + $0x3] ss:$8 sm:$0xf] }
 0x16e   :  { %1411 = vmatpush1.bf16.msra.mxu0 %v2578_v15  ;;  %1493 = vmatpush1.bf16.msra.mxu1 %v2581_v16  ;;  %v692_v15 = vrot.slane %v2037_v14, %v2792_v8  ;;  %v700_v16 = vrot.slane %v2037_v14, %v2814_v23 }
 0x16f   :  { %1412 = vmatprep.subr.bf16.mxu0 %v2586_v17  ;;  %1494 = vmatprep.subr.bf16.mxu1 %v2589_v18  ;;  %v696_v17 = vrot.slane %v2037_v14, %v2800_v10  ;;  %v704_v18 = vrot.slane %v2037_v14, %v2807_v33 }
 0x172   :  { %1413 = vmatpush1.bf16.msra.mxu0 %v2584_v19  ;;  %1495 = vmatpush1.bf16.msra.mxu1 %v2587_v20 }
 0x173   :  { %1414 = vmatprep.subr.bf16.mxu0 %v2592_v21  ;;  %1496 = vmatprep.subr.bf16.mxu1 %v2595_v22 }
 0x176   :  { %1415 = vmatpush1.bf16.msra.mxu0 %v2590_v24  ;;  %1497 = vmatpush1.bf16.msra.mxu1 %v2593_v25 }
 0x177   :  { %1416 = vmatprep.subr.bf16.mxu0 %v2598_v27  ;;  %1498 = vmatprep.subr.bf16.mxu1 %v2601_v28 }
 0x17a   :  { %1417 = vmatpush1.bf16.msra.mxu0 %v2596_v29  ;;  %1499 = vmatpush1.bf16.msra.mxu1 %v2599_v30 }
 0x17b   :  { %1418 = vmatprep.subr.bf16.mxu0 %v2604_v7  ;;  %1500 = vmatprep.subr.bf16.mxu1 %v2607_v32 }
 0x17e   :  { %1419 = vmatpush1.bf16.msra.mxu0 %v2602_v34  ;;  %1501 = vmatpush1.bf16.msra.mxu1 %v2605_v35 }
 0x17f   :  { %1420 = vmatprep.subr.bf16.mxu0 %v2610_v9  ;;  %1502 = vmatprep.subr.bf16.mxu1 %v2613_v37 }
 0x182   :  { %1421 = vmatpush1.bf16.msra.mxu0 %v2608_v38  ;;  %1503 = vmatpush1.bf16.msra.mxu1 %v2611_v39 }
 0x183   :  { %2264 = vmatprep.subr.bf16.mxu0 %v2614_v42  ;;  %2286 = vmatprep.subr.bf16.mxu1 %v2615_v43 }
 0x185   :  { %1423 = vmatmul.mubr.bf16.vlgmr.msra.gmra.mrb[4].mxu0 %v558_v41  ;;  %1505 = vmatmul.mubr.bf16.vlgmr.msra.gmra.mrb[4].mxu1 %v558_v41 }
 0x186   :  { %2265 = vmatpush3.bf16.msra.mxu0 %v2616_v44  ;;  %2287 = vmatpush3.bf16.msra.mxu1 %v2617_v45 }
 0x187   :  { %2266 = vmatprep.subr.bf16.mxu0 %v2618_v46  ;;  %2288 = vmatprep.subr.bf16.mxu1 %v2619_v47 }
 0x18a   :  { %2267 = vmatpush3.bf16.msra.mxu0 %v2620_v48  ;;  %2289 = vmatpush3.bf16.msra.mxu1 %v2621_v49 }
 0x18b   :  { %2268 = vmatprep.subr.bf16.mxu0 %v2622_v50  ;;  %2290 = vmatprep.subr.bf16.mxu1 %v2623_v51 }
 0x18e   :  { %2269 = vmatpush3.bf16.msra.mxu0 %v2624_v52  ;;  %2291 = vmatpush3.bf16.msra.mxu1 %v2625_v53 }
 0x18f   :  { %2270 = vmatprep.subr.bf16.mxu0 %v2626_v54  ;;  %2292 = vmatprep.subr.bf16.mxu1 %v2627_v55 }
 0x192   :  { %2271 = vmatpush3.bf16.msra.mxu0 %v2628_v56  ;;  %2293 = vmatpush3.bf16.msra.mxu1 %v2629_v57 }
 0x193   :  { %2272 = vmatprep.subr.bf16.mxu0 %v2630_v58  ;;  %2294 = vmatprep.subr.bf16.mxu1 %v2631_v59 }
 0x196   :  { %2273 = vmatpush3.bf16.msra.mxu0 %v2632_v60  ;;  %2295 = vmatpush3.bf16.msra.mxu1 %v2633_v61 }
 0x197   :  { %2274 = vmatprep.subr.bf16.mxu0 %v2634_v62  ;;  %2296 = vmatprep.subr.bf16.mxu1 %v2635_v63 }
 0x19a   :  { %2275 = vmatpush3.bf16.msra.mxu0 %v2636_v0  ;;  %2297 = vmatpush3.bf16.msra.mxu1 %v2637_v1 }
 0x19b   :  { %2276 = vmatprep.subr.bf16.mxu0 %v2638_v2  ;;  %2298 = vmatprep.subr.bf16.mxu1 %v2639_v3 }
 0x19e   :  { %2277 = vmatpush3.bf16.msra.mxu0 %v2640_v4  ;;  %2299 = vmatpush3.bf16.msra.mxu1 %v2641_v5 }
 0x19f   :  { %2278 = vmatprep.subr.bf16.mxu0 %v2642_v6  ;;  %2300 = vmatprep.subr.bf16.mxu1 %v2643_v11 }
 0x1a2   :  { %2279 = vmatpush3.bf16.msra.mxu0 %v2644_v12  ;;  %2301 = vmatpush3.bf16.msra.mxu1 %v2645_v13 }
 0x258   :  { %v1424_v19 = vpop.f32.mrb[4].mxu0  ;;  %v1506_v20 = vpop.f32.mrb[4].mxu1 }
 0x259   :  { %v2922_v21 = vadd.f32 %v1424_v19, %v692_v15  ;;  %v2924_v22 = vadd.f32 %v1506_v20, %v700_v16  ;;  %v1426_v24 = vpop.f32.mrb[5].mxu0  ;;  %v1508_v25 = vpop.f32.mrb[5].mxu1 }
 0x25a   :  { %v2926_v26 = vadd.f32 %v1426_v24, %v696_v17  ;;  %v2928_v27 = vadd.f32 %v1508_v25, %v704_v18  ;;  %v1428_v28 = vpop.f32.mrb[6].mxu0  ;;  %v1510_v29 = vpop.f32.mrb[6].mxu1 }
 0x25b   :  { %v1514_v30 = vsel %vm1513_vm0, %v2922_v21, 0.0  ;;  %v1547_v31 = vmul.f32 %v2922_v21, %v2922_v21  ;;  %v1528_v7 = vsel %vm1513_vm0, %v2924_v22, 0.0  ;;  %v1549_v32 = vmul.f32 %v2924_v22, %v2924_v22  ;;  %v1429_v34 = vpop.f32.mrb[7].mxu0  ;;  %v1511_v35 = vpop.f32.mrb[7].mxu1 }
 0x25c   :  { %v1515_v36 = vrot.slane %v1514_v30, 4  ;;  %v1529_v9 = vrot.slane %v1528_v7, 4  ;;  %v1521_v37 = vsel %vm1513_vm0, %v2926_v26, 0.0  ;;  %v1548_v38 = vmul.f32 %v2926_v26, %v2926_v26 }
 0x25d   :  { %v1551_v39 = vsel %vm1513_vm0, %v1547_v31, 0.0  ;;  %v1565_v40 = vsel %vm1513_vm0, %v1549_v32, 0.0  ;;  %v1522_v41 = vrot.slane %v1521_v37, 4  ;;  %v1535_v42 = vsel %vm1513_vm0, %v2928_v27, 0.0 }
 0x25e   :  { %v1516_v43 = vadd.f32 %v1515_v36, %v1514_v30  ;;  %v1552_v44 = vrot.slane %v1551_v39, 4  ;;  %v1530_v45 = vadd.f32 %v1529_v9, %v1528_v7  ;;  %v1566_v46 = vrot.slane %v1565_v40, 4 }
 0x25f   :  { %v1523_v47 = vadd.f32 %v1522_v41, %v1521_v37  ;;  %v1558_v48 = vsel %vm1513_vm0, %v1548_v38, 0.0  ;;  %v1536_v49 = vrot.slane %v1535_v42, 4  ;;  %v1550_v50 = vmul.f32 %v2928_v27, %v2928_v27 }
 0x260   :  { %v1517_v51 = vrot.slane %v1516_v43, 2  ;;  %v1553_v52 = vadd.f32 %v1552_v44, %v1551_v39  ;;  %v1531_v53 = vrot.slane %v1530_v45, 2  ;;  %v1567_v54 = vadd.f32 %v1566_v46, %v1565_v40 }
 0x261   :  { %v1524_v55 = vrot.slane %v1523_v47, 2  ;;  %v1559_v56 = vrot.slane %v1558_v48, 4  ;;  %v1537_v57 = vadd.f32 %v1536_v49, %v1535_v42  ;;  %v1572_v58 = vsel %vm1513_vm0, %v1550_v50, 0.0 }
 0x262   :  { %v1518_v59 = vadd.f32 %v1517_v51, %v1516_v43  ;;  %v1554_v60 = vrot.slane %v1553_v52, 2  ;;  %v1532_v61 = vadd.f32 %v1531_v53, %v1530_v45  ;;  %v1568_v62 = vrot.slane %v1567_v54, 2 }
 0x263   :  { %v1525_v63 = vadd.f32 %v1524_v55, %v1523_v47  ;;  %v1560_v0 = vadd.f32 %v1559_v56, %v1558_v48  ;;  %v1538_v1 = vrot.slane %v1537_v57, 2  ;;  %v1573_v2 = vrot.slane %v1572_v58, 4 }
 0x264   :  { %v1519_v3 = vrot.slane %v1518_v59, 1  ;;  %v1555_v4 = vadd.f32 %v1554_v60, %v1553_v52  ;;  %v1533_v5 = vrot.slane %v1532_v61, 1  ;;  %v1569_v6 = vadd.f32 %v1568_v62, %v1567_v54  ;;  %v2039_v60 = vld [vmem:[%s2986_s0 + $0x5] ss:$8 sm:$0xf] }
 0x265   :  { %v1526_v11 = vrot.slane %v1525_v63, 1  ;;  %v1561_v12 = vrot.slane %v1560_v0, 2  ;;  %v1539_v13 = vadd.f32 %v1538_v1, %v1537_v57  ;;  %v1574_v14 = vadd.f32 %v1573_v2, %v1572_v58 }
 0x266   :  { %v1520_v15 = vadd.f32 %v1519_v3, %v1518_v59  ;;  %v1556_v16 = vrot.slane %v1555_v4, 1  ;;  %v1534_v17 = vadd.f32 %v1533_v5, %v1532_v61  ;;  %v1570_v18 = vrot.slane %v1569_v6, 1  ;;  %v2038_v59 = vld [vmem:[%s2986_s0 + $0x4] ss:$8 sm:$0xf] }
 0x267   :  { %v1527_v19 = vadd.f32 %v1526_v11, %v1525_v63  ;;  %v1562_v20 = vadd.f32 %v1561_v12, %v1560_v0  ;;  %v1540_v24 = vrot.slane %v1539_v13, 1  ;;  %v1575_v25 = vrot.slane %v1574_v14, 2 }
 0x268   :  { %v1543_v28 = vmul.f32 0.5, %v1520_v15  ;;  %v1557_v29 = vadd.f32 %v1556_v16, %v1555_v4  ;;  %v1545_v30 = vmul.f32 0.5, %v1534_v17  ;;  %v1571_v31 = vadd.f32 %v1570_v18, %v1569_v6 }
 0x269   :  { %v1544_v7 = vmul.f32 0.5, %v1527_v19  ;;  %v1563_v32 = vrot.slane %v1562_v20, 1  ;;  %v1541_v34 = vadd.f32 %v1540_v24, %v1539_v13  ;;  %v1576_v35 = vadd.f32 %v1575_v25, %v1574_v14 }
 0x26a   :  { %v1579_v36 = vmul.f32 0.5, %v1557_v29  ;;  %v1583_v9 = vmul.f32 %v1543_v28, %v1543_v28  ;;  %v1581_v37 = vmul.f32 0.5, %v1571_v31  ;;  %v1585_v38 = vmul.f32 %v1545_v30, %v1545_v30 }
 0x26b   :  { %v1564_v39 = vadd.f32 %v1563_v32, %v1562_v20  ;;  %v1584_v40 = vmul.f32 %v1544_v7, %v1544_v7  ;;  %v1546_v42 = vmul.f32 0.5, %v1541_v34  ;;  %v1577_v43 = vrot.slane %v1576_v35, 1 }
 0x26c   :  { %v1587_v41 = vsub.f32 %v1579_v36, %v1583_v9  ;;  %v1589_v44 = vsub.f32 %v1581_v37, %v1585_v38  ;;  %v1595_v61 = vsub.f32 %v2922_v21, %v1543_v28  ;;  %v1615_v62 = vrot.slane %v2038_v59, %v2792_v8  ;;  %v58_v38 = vld [vmem:[%s2986_s0 + $0x6] ss:$0 sm:$0xff] }
 0x26d   :  { %v1580_v45 = vmul.f32 0.5, %v1564_v39  ;;  %v1578_v47 = vadd.f32 %v1577_v43, %v1576_v35  ;;  %v1586_v48 = vmul.f32 %v1546_v42, %v1546_v42  ;;  %v1597_v0 = vsub.f32 %v2924_v22, %v1545_v30 }
 0x26e   :  { %v1591_v46 = vmax.f32 %v1587_v41, 0.0  ;;  %v1593_v49 = vmax.f32 %v1589_v44, 0.0  ;;  %v1623_v1 = vrot.slane %v2038_v59, %v2814_v23  ;;  %v1640_v4 = vrot.slane %v2039_v60, %v2792_v8 }
 0x26f   :  { %v1588_v50 = vsub.f32 %v1580_v45, %v1584_v40  ;;  %v1582_v52 = vmul.f32 0.5, %v1578_v47  ;;  %v1596_v6 = vsub.f32 %v2926_v26, %v1544_v7  ;;  %v1619_v11 = vrot.slane %v2038_v59, %v2800_v10 }
 0x270   :  { %v1599_v51 = vadd.f32 1e-05, %v1591_v46  ;;  %v1601_v53 = vadd.f32 1e-05, %v1593_v49  ;;  %v1648_v12 = vrot.slane %v2039_v60, %v2814_v23  ;;  %v1644_v16 = vrot.slane %v2039_v60, %v2800_v10 }
 0x271   :  { %v1592_v54 = vmax.f32 %v1588_v50, 0.0  ;;  %v1590_v55 = vsub.f32 %v1582_v52, %v1586_v48  ;;  %v1598_v22 = vsub.f32 %v2928_v27, %v1546_v42  ;;  %v1627_v17 = vrot.slane %v2038_v59, %v2807_v33 }
 0x272   :  { %2646 = vrsqrt.f32 %v1599_v51  ;;  %v1652_v26 = vrot.slane %v2039_v60, %v2807_v33 }
 0x273   :  { %2648 = vrsqrt.f32 %v1601_v53  ;;  %v1600_v56 = vadd.f32 1e-05, %v1592_v54  ;;  %v1594_v57 = vmax.f32 %v1590_v55, 0.0  ;;  %v49_v53 = vld [vmem:[%s2986_s0 + $0x10] sm:$0x3] }
 0x275   :  { %2650 = vrsqrt.f32 %v1600_v56  ;;  %v1602_v58 = vadd.f32 1e-05, %v1594_v57 }
 0x277   :  { %2652 = vrsqrt.f32 %v1602_v58 }
 0x27c   :  { %v2647_v63 = vpop.eup %2646 }
 0x27d   :  { %v2649_v2 = vpop.eup %2648  ;;  %v1607_v3 = vmul.f32 %v2647_v63, %v1595_v61 }
 0x27e   :  { %v1609_v5 = vmul.f32 %v2649_v2, %v1597_v0 }
 0x27f   :  { %v2651_v13 = vpop.eup %2650  ;;  %v1632_v21 = vmul.f32 %v1615_v62, %v1607_v3 }
 0x280   :  { %v1634_v14 = vmul.f32 %v1623_v1, %v1609_v5  ;;  %v1608_v15 = vmul.f32 %v2651_v13, %v1596_v6 }
 0x281   :  { %v1657_v18 = vadd.f32 %v1640_v4, %v1632_v21  ;;  %v2653_v19 = vpop.eup %2652 }
 0x282   :  { %v1633_v8 = vmul.f32 %v1619_v11, %v1608_v15  ;;  %v1659_v20 = vadd.f32 %v1648_v12, %v1634_v14  ;;  %v1610_v24 = vmul.f32 %v2653_v19, %v1598_v22 }
 0x283   :  { %v1661_v25 = vmul.f32 0.2, %v1657_v18 }
 0x284   :  { %v1658_v28 = vadd.f32 %v1644_v16, %v1633_v8  ;;  %v1635_v23 = vmul.f32 %v1627_v17, %v1610_v24  ;;  %v1663_v30 = vmul.f32 0.2, %v1659_v20 }
 0x285   :  { %v1665_v7 = vmax.f32 %v1657_v18, %v1661_v25 }
 0x286   :  { %v1662_v29 = vmul.f32 0.2, %v1658_v28  ;;  %v1660_v31 = vadd.f32 %v1652_v26, %v1635_v23  ;;  %v1667_v27 = vmax.f32 %v1659_v20, %v1663_v30 }
 0x287   :  { %v1669_v36 = vpack.c.bf16 %v1665_v7, %v1665_v7 }
 0x288   :  { %v1666_v32 = vmax.f32 %v1658_v28, %v1662_v29  ;;  %v1664_v10 = vmul.f32 0.2, %v1660_v31  ;;  %v1671_v37 = vpack.c.bf16 %v1667_v27, %v1667_v27 }
 0x28a   :  { %v1670_v34 = vpack.c.bf16 %v1666_v32, %v1666_v32  ;;  %v1668_v35 = vmax.f32 %v1660_v31, %v1664_v10 }
 0x28c   :  { %1961 = vmatprep.mubr.bf16.mxu0 %v1670_v34  ;;  %v1672_v9 = vpack.c.bf16 %v1668_v35, %v1668_v35 }
 0x28d   :  { %1962 = vmatmul.mubr.bf16.vlgmr.msra.gmra.mrb[8].mxu0 %v1669_v36 }
 0x28e   :  { %2001 = vmatprep.mubr.bf16.mxu1 %v1672_v9 }
 0x28f   :  { %2002 = vmatmul.mubr.bf16.vlgmr.msra.gmra.mrb[8].mxu1 %v1671_v37 }
 0x360   :  { %v2280_v33 = vpop.f32.mrb[8].mxu0 }
 0x361   :  { %v2281_v39 = vpop.f32.mrb[9].mxu0 }
 0x362   :  { %v2282_v40 = vadd.f32 %v2281_v39, %v2280_v33  ;;  %v2283_v41 = vpop.f32.mrb[10].mxu0  ;;  %v2302_v42 = vpop.f32.mrb[8].mxu1 }
 0x363   :  { %v2284_v43 = vpop.f32.mrb[11].mxu0  ;;  %v2303_v45 = vpop.f32.mrb[9].mxu1 }
 0x364   :  { %v1964_v44 = vadd.f32 %v2282_v40, %v58_v38  ;;  %v2304_v46 = vadd.f32 %v2303_v45, %v2302_v42  ;;  %v2305_v47 = vpop.f32.mrb[10].mxu1 }
 0x365   :  { %v2306_v48 = vpop.f32.mrb[11].mxu1 }
 0x366   :  { %v2004_v49 = vadd.f32 %v2304_v46, %v1964_v44 }
 0x368   :  { %v2009_v50 = vmul.f32 0.5, %v2004_v49 }
 0x36a   :  { %v2010_v51 = vmul.f32 1.442695, %v2009_v50 }
 0x36c   :  { %2654 = vpow2.f32 %v2010_v51 }
 0x376   :  { %v2655_v52 = vpop.eup %2654 }
 0x377   :  { %2013 = vrot.lane.b32.xlu0 %v2655_v52, %s2732_s8 }
 0x3e9   :  { %v2014_v54 = vpop.permute.xlu0 %2013 }
 0x3ea   :  { %v2016_v55 = vmul.f32 %v2014_v54, %v49_v53 }
 0x3ec   :  { %v2017_v56 = vadd.f32 %v2016_v55, %v2004_v49 }
 0x3ee   :  { %2019 = vst.msk [vmem:[#allocation7] sm:$0x3] %vm2018_vm1, %v2017_v56 }
 0x3ef   :  { %2711 = shalt.err (!%p2708_p6)
}
 0x3f0   :  { %s2712_s14 = scalar_lea.hbm %s2990_s4, 32 }
 0x3f1   :  { %p2713_p7 = scmp.ne.s32.totalorder %s2990_s4, %s2712_s14  ;;  %p2716_p8 = scmp.lt.u32.totalorder %s2712_s14, %s2990_s4 }
 0x3f3   :  { %p2718_p9 = pnand %p2716_p8, %p2713_p7 }
 0x3f5   :  { %2721 = shalt.err (!%p2718_p9)
}
 0x3f6   :  { %2029 = dma.vmem_to_hbm [thread:$0]  %s2027_s12, 32, %s2990_s4, [#allocation4]  }
 0x3f7   :  { %2726 = dma.done.wait [#allocation4], 32  }
 0x3f8   :  { %2727 = vsyncadd [#allocation4], 4294967264 }
 0x3f9   :  { %2033 = vsyncpa [#allocation3], 1 }
 0x3fa   :  { %2034 = vsyncpa [#allocation6], 1 }
 0x3fb   :  { %2035 = vsyncpa [#allocation4], 1 }

</bundles_post_ra>
